<compile_context>
chip_gen: v7x
topology: tpu7x:2x2x1
jax: 0.10.0
libtpu: 0.0.40
codegen_flags: <defaults>
</compile_context>

<pallas_src>
import jax
import jax.numpy as jnp
from jax.experimental import pallas as pl
from jax.experimental.pallas import tpu as pltpu


LANE = 128  # TPU lane width; the batch axis is packed onto lanes.


def _round_up(x, m):
    return ((x + m - 1) // m) * m


def actor_mlp_kernel(x_ref, w1_ref, b1_ref, w2_ref, b2_ref, w3_ref, b3_ref, o_ref):
    """Fused transposed MLP (batch on the lane axis).

    x_ref : (3, block_b)   f32   transposed state block
    w1_ref: (64, 3)        f32   layer-1 weight, (out, in)
    b1_ref: (64, 1)        f32
    w2_ref: (64, 64)       bf16  layer-2 weight, (out, in)
    b2_ref: (64, 1)        f32
    w3_ref: (64, 1)        f32   layer-3 weight column
    b3_ref: (1, 1)         f32
    o_ref : (1, block_b)   f32   tanh output, batch on lanes
    """
    x = x_ref[...]            # (3, block_b) f32
    w1 = w1_ref[...]          # (64, 3)      f32

    # Layer 1 (in=3) on the VPU: three broadcast FMAs, full f32 precision.
    h1 = (w1[:, 0:1] * x[0:1, :]
          + w1[:, 1:2] * x[1:2, :]
          + w1[:, 2:3] * x[2:3, :]
          + b1_ref[...])                                    # (64, block_b)
    h1 = jnp.maximum(h1, 0.0)

    # Layer 2 (64x64) on the MXU: bf16 operands, f32 accumulation.
    h2 = jnp.dot(w2_ref[...], h1.astype(jnp.bfloat16),
                 preferred_element_type=jnp.float32) + b2_ref[...]
    h2 = jnp.maximum(h2, 0.0)                               # (64, block_b)

    # Layer 3 (64 -> 1) on VPU + cross-sublane reduce, full f32.
    h3 = jnp.sum(w3_ref[...] * h2, axis=0, keepdims=True) + b3_ref[...]
    o_ref[...] = jnp.tanh(h3)                               # (1, block_b)


def prepare_params(params):
    """One-time conversion of (w1,b1,w2,b2,w3,b3) into the kernel's device layout.

    Hoisted out of the forward call so a control loop does not pay for weight
    transposes / casts on every inference.
    """
    w1, b1, w2, b2, w3, b3 = params
    return (
        jnp.asarray(w1, jnp.float32).T,                    # (64, 3)  f32
        jnp.asarray(b1, jnp.float32).reshape(1, -1).T,     # (64, 1)  f32
        jnp.asarray(w2, jnp.bfloat16).T,                   # (64, 64) bf16
        jnp.asarray(b2, jnp.float32).reshape(1, -1).T,     # (64, 1)  f32
        jnp.asarray(w3, jnp.float32).reshape(-1, 1),       # (64, 1)  f32
        jnp.asarray(b3, jnp.float32).reshape(1, 1),        # (1, 1)   f32
    )


def action_model_forward(state, prepared, *, block_b=None):
    """state: (B, 3) float32. Returns (B, 1) float32 in [-1, 1]."""
    w1t, b1t, w2t, b2t, w3c, b3c = prepared
    B, in_dim = state.shape

    # Batch tile on the lane axis (multiple of 128). Single step for small B;
    # >=2 steps for larger B so v7x's two TensorCores each get a share of the
    # "parallel" batch axis. Large batches use big tiles to amortize the
    # ~0.35 us per-grid-step pipeline overhead (working set stays tiny).
    if block_b is None:
        if B <= 2 * LANE:
            block_b = _round_up(max(B, 1), LANE)
        else:
            block_b = min(4096, _round_up(-(-B // 2), LANE))
    block_b = _round_up(block_b, LANE)
    Bp = _round_up(B, block_b)

    # Transposed, lane-packed input (3, Bp); padded batch columns are zero and
    # their (harmless) outputs are sliced off below.
    xt = jnp.zeros((in_dim, Bp), jnp.float32).at[:, :B].set(
        state.T.astype(jnp.float32))

    grid = (Bp // block_b,)

    # Constant-index full-array blocks: the pipeline only re-issues an input DMA
    # when the mapped block index changes, so weights are fetched once and stay
    # resident in VMEM across all grid steps.
    def const_spec(arr):
        return pl.BlockSpec(arr.shape, lambda i: (0, 0))

    h1_dim = w1t.shape[0]
    h2_dim = w2t.shape[0]
    flops = 2 * Bp * (in_dim * h1_dim + h1_dim * h2_dim + h2_dim * 1)
    bytes_accessed = (
        xt.size * 4
        + (w1t.size + b1t.size + b2t.size + w3c.size + b3c.size) * 4
        + w2t.size * 2
        + Bp * 4
    )

    out = pl.pallas_call(
        actor_mlp_kernel,
        out_shape=jax.ShapeDtypeStruct((1, Bp), jnp.float32),
        grid_spec=pltpu.PrefetchScalarGridSpec(
            num_scalar_prefetch=0,
            grid=grid,
            in_specs=[
                pl.BlockSpec((in_dim, block_b), lambda i: (0, i)),
                const_spec(w1t), const_spec(b1t),
                const_spec(w2t), const_spec(b2t),
                const_spec(w3c), const_spec(b3c),
            ],
            out_specs=pl.BlockSpec((1, block_b), lambda i: (0, i)),
        ),
        compiler_params=pltpu.CompilerParams(
            dimension_semantics=("parallel",),  # batch axis -> megacore on v7x
        ),
        cost_estimate=pl.CostEstimate(
            flops=int(flops),
            transcendentals=int(Bp),
            bytes_accessed=int(bytes_accessed),
        ),
    )(xt, w1t, b1t, w2t, b2t, w3c, b3c)

    # Strip batch padding and restore the (B, 1) PyTorch output shape.
    return out[:, :B].T


def init_params(key):
    """Deterministic init mimicking PyTorch Linear default (uniform +- 1/sqrt(fan_in)).

    Weights are stored (in_features, out_features) — transposed vs torch's (out, in).
    """
    dims = [(3, 64), (64, 64), (64, 1)]
    params = []
    for fan_in, fan_out in dims:
        key, kw, kb = jax.random.split(key, 3)
        bound = 1.0 / jnp.sqrt(jnp.float32(fan_in))
        w = jax.random.uniform(kw, (fan_in, fan_out), jnp.float32, -bound, bound)
        b = jax.random.uniform(kb, (1, fan_out), jnp.float32, -bound, bound)
        params += [w, b]
    return tuple(params)


def reference_forward(state, params):
    """Pure-JAX f32 reference matching the PyTorch module semantics."""
    w1, b1, w2, b2, w3, b3 = params
    h1 = jnp.maximum(state @ w1 + b1, 0.0)
    h2 = jnp.maximum(h1 @ w2 + b2, 0.0)
    return jnp.tanh(h2 @ w3 + b3)


if __name__ == "__main__":
    key = jax.random.PRNGKey(0)
    key, kx1, kx2 = jax.random.split(key, 3)
    params = init_params(key)
    prepared = prepare_params(params)   # one-time weight preparation (hoisted)

    # Small batch: single full-batch grid step.
    B = 16
    state = jax.random.normal(kx1, (B, 3), jnp.float32)
    out = jax.block_until_ready(action_model_forward(state, prepared))
    ref = reference_forward(state, params)
    assert out.shape == (B, 1)
    # Only the 64x64 layer uses bf16 MXU operands; layers 1 and 3 are full f32.
    assert jnp.allclose(out, ref, atol=2e-2, rtol=0.0), "mismatch vs pure-JAX reference"

    # Ragged larger batch: exercises the multi-step tiled path (2 grid steps)
    # and the batch-padding slice.
    B2 = 300
    state2 = jax.random.normal(kx2, (B2, 3), jnp.float32)
    out2 = jax.block_until_ready(action_model_forward(state2, prepared))
    ref2 = reference_forward(state2, params)
    assert out2.shape == (B2, 1)
    assert jnp.allclose(out2, ref2, atol=2e-2, rtol=0.0), "mismatch (tiled path)"

    print("KERNEL_OK")
</pallas_src>

<mosaic_0001>
module attributes {stable_mosaic.version = 11 : i64} {
  func.func @actor_mlp_kernel(%arg0: i32, %arg1: memref<3x128xf32, #tpu.memory_space<vmem>>, %arg2: memref<64x3xf32, #tpu.memory_space<vmem>>, %arg3: memref<64x1xf32, #tpu.memory_space<vmem>>, %arg4: memref<64x64xbf16, #tpu.memory_space<vmem>>, %arg5: memref<64x1xf32, #tpu.memory_space<vmem>>, %arg6: memref<64x1xf32, #tpu.memory_space<vmem>>, %arg7: memref<1x1xf32, #tpu.memory_space<vmem>>, %arg8: memref<1x128xf32, #tpu.memory_space<vmem>>) attributes {dimension_semantics = [#tpu.dimension_semantics<parallel>], iteration_bounds = array<i64: 1>, scalar_prefetch = 0 : i64, scratch_operands = 0 : i64, tpu.core_type = #tpu.core_type<tc>, window_params = [{transform_indices = @transform_0, window_bounds = array<i64: 3, 128>}, {pipeline_mode = #tpu.pipeline_mode<synchronous>, transform_indices = @transform_1, window_bounds = array<i64: 64, 3>}, {pipeline_mode = #tpu.pipeline_mode<synchronous>, transform_indices = @transform_2, window_bounds = array<i64: 64, 1>}, {pipeline_mode = #tpu.pipeline_mode<synchronous>, transform_indices = @transform_3, window_bounds = array<i64: 64, 64>}, {pipeline_mode = #tpu.pipeline_mode<synchronous>, transform_indices = @transform_4, window_bounds = array<i64: 64, 1>}, {pipeline_mode = #tpu.pipeline_mode<synchronous>, transform_indices = @transform_5, window_bounds = array<i64: 64, 1>}, {pipeline_mode = #tpu.pipeline_mode<synchronous>, transform_indices = @transform_6, window_bounds = array<i64: 1, 1>}, {transform_indices = @transform_7, window_bounds = array<i64: 1, 128>}]} {
    %c0 = arith.constant 0 : index
    %c0_0 = arith.constant 0 : index
    %0 = vector.load %arg1[%c0, %c0_0] : memref<3x128xf32, #tpu.memory_space<vmem>>, vector<3x128xf32>
    %c0_1 = arith.constant 0 : index
    %c0_2 = arith.constant 0 : index
    %1 = vector.load %arg2[%c0_1, %c0_2] : memref<64x3xf32, #tpu.memory_space<vmem>>, vector<64x3xf32>
    %2 = vector.extract_strided_slice %1 {offsets = [0, 0], sizes = [64, 1], strides = [1, 1]} : vector<64x3xf32> to vector<64x1xf32>
    %3 = vector.extract_strided_slice %0 {offsets = [0, 0], sizes = [1, 128], strides = [1, 1]} : vector<3x128xf32> to vector<1x128xf32>
    %4 = vector.broadcast %2 : vector<64x1xf32> to vector<64x128xf32>
    %5 = vector.broadcast %3 : vector<1x128xf32> to vector<64x128xf32>
    %6 = arith.mulf %4, %5 : vector<64x128xf32>
    %7 = vector.extract_strided_slice %1 {offsets = [0, 1], sizes = [64, 1], strides = [1, 1]} : vector<64x3xf32> to vector<64x1xf32>
    %8 = vector.extract_strided_slice %0 {offsets = [1, 0], sizes = [1, 128], strides = [1, 1]} : vector<3x128xf32> to vector<1x128xf32>
    %9 = vector.broadcast %7 : vector<64x1xf32> to vector<64x128xf32>
    %10 = vector.broadcast %8 : vector<1x128xf32> to vector<64x128xf32>
    %11 = arith.mulf %9, %10 : vector<64x128xf32>
    %12 = arith.addf %6, %11 : vector<64x128xf32>
    %13 = vector.extract_strided_slice %1 {offsets = [0, 2], sizes = [64, 1], strides = [1, 1]} : vector<64x3xf32> to vector<64x1xf32>
    %14 = vector.extract_strided_slice %0 {offsets = [2, 0], sizes = [1, 128], strides = [1, 1]} : vector<3x128xf32> to vector<1x128xf32>
    %15 = vector.broadcast %13 : vector<64x1xf32> to vector<64x128xf32>
    %16 = vector.broadcast %14 : vector<1x128xf32> to vector<64x128xf32>
    %17 = arith.mulf %15, %16 : vector<64x128xf32>
    %18 = arith.addf %12, %17 : vector<64x128xf32>
    %c0_3 = arith.constant 0 : index
    %c0_4 = arith.constant 0 : index
    %19 = vector.load %arg3[%c0_3, %c0_4] : memref<64x1xf32, #tpu.memory_space<vmem>>, vector<64x1xf32>
    %20 = vector.broadcast %19 : vector<64x1xf32> to vector<64x128xf32>
    %21 = arith.addf %18, %20 : vector<64x128xf32>
    %cst = arith.constant 0.000000e+00 : f32
    %22 = vector.broadcast %cst : f32 to vector<64x128xf32>
    %23 = arith.maximumf %21, %22 : vector<64x128xf32>
    %c0_5 = arith.constant 0 : index
    %c0_6 = arith.constant 0 : index
    %24 = vector.load %arg4[%c0_5, %c0_6] : memref<64x64xbf16, #tpu.memory_space<vmem>>, vector<64x64xbf16>
    %25 = arith.truncf %23 : vector<64x128xf32> to vector<64x128xbf16>
    %cst_7 = arith.constant dense<0.000000e+00> : vector<64x128xf32>
    %26 = tpu.matmul %24, %25, %cst_7 {dimension_numbers = #tpu.dot_dimension_numbers<[1], [0], [0], [1], [0, 0, 1, 1], [], []>} : vector<64x64xbf16>, vector<64x128xbf16>, vector<64x128xf32> -> vector<64x128xf32>
    %c0_8 = arith.constant 0 : index
    %c0_9 = arith.constant 0 : index
    %27 = vector.load %arg5[%c0_8, %c0_9] : memref<64x1xf32, #tpu.memory_space<vmem>>, vector<64x1xf32>
    %28 = vector.broadcast %27 : vector<64x1xf32> to vector<64x128xf32>
    %29 = arith.addf %26, %28 : vector<64x128xf32>
    %cst_10 = arith.constant 0.000000e+00 : f32
    %30 = vector.broadcast %cst_10 : f32 to vector<64x128xf32>
    %31 = arith.maximumf %29, %30 : vector<64x128xf32>
    %c0_11 = arith.constant 0 : index
    %c0_12 = arith.constant 0 : index
    %32 = vector.load %arg6[%c0_11, %c0_12] : memref<64x1xf32, #tpu.memory_space<vmem>>, vector<64x1xf32>
    %33 = vector.broadcast %32 : vector<64x1xf32> to vector<64x128xf32>
    %34 = arith.mulf %33, %31 : vector<64x128xf32>
    %cst_13 = arith.constant dense<0.000000e+00> : vector<128xf32>
    %35 = vector.multi_reduction <add>, %34, %cst_13 [0] : vector<64x128xf32> to vector<128xf32>
    %36 = vector.shape_cast %35 : vector<128xf32> to vector<1x128xf32>
    %c0_14 = arith.constant 0 : index
    %c0_15 = arith.constant 0 : index
    %37 = vector.load %arg7[%c0_14, %c0_15] : memref<1x1xf32, #tpu.memory_space<vmem>>, vector<1x1xf32>
    %38 = vector.broadcast %37 : vector<1x1xf32> to vector<1x128xf32>
    %39 = arith.addf %36, %38 : vector<1x128xf32>
    %40 = math.tanh %39 : vector<1x128xf32>
    %c0_16 = arith.constant 0 : index
    %c0_17 = arith.constant 0 : index
    %41 = vector.load %arg8[%c0_16, %c0_17] : memref<1x128xf32, #tpu.memory_space<vmem>>, vector<1x128xf32>
    tpu.vector_store %arg8[%c0_16, %c0_17], %40 {strides = array<i32>} : memref<1x128xf32, #tpu.memory_space<vmem>>, vector<1x128xf32>,
    return
  }
  func.func @transform_0(%arg0: i32) -> (i32, i32) {
    %c0_i32 = arith.constant 0 : i32
    %c0_i32_0 = arith.constant 0 : i32
    return %c0_i32, %arg0 : i32, i32
  }
  func.func @transform_1(%arg0: i32) -> (i32, i32) {
    %c0_i32 = arith.constant 0 : i32
    %c0_i32_0 = arith.constant 0 : i32
    %c0_i32_1 = arith.constant 0 : i32
    return %c0_i32, %c0_i32_0 : i32, i32
  }
  func.func @transform_2(%arg0: i32) -> (i32, i32) {
    %c0_i32 = arith.constant 0 : i32
    %c0_i32_0 = arith.constant 0 : i32
    %c0_i32_1 = arith.constant 0 : i32
    return %c0_i32, %c0_i32_0 : i32, i32
  }
  func.func @transform_3(%arg0: i32) -> (i32, i32) {
    %c0_i32 = arith.constant 0 : i32
    %c0_i32_0 = arith.constant 0 : i32
    %c0_i32_1 = arith.constant 0 : i32
    return %c0_i32, %c0_i32_0 : i32, i32
  }
  func.func @transform_4(%arg0: i32) -> (i32, i32) {
    %c0_i32 = arith.constant 0 : i32
    %c0_i32_0 = arith.constant 0 : i32
    %c0_i32_1 = arith.constant 0 : i32
    return %c0_i32, %c0_i32_0 : i32, i32
  }
  func.func @transform_5(%arg0: i32) -> (i32, i32) {
    %c0_i32 = arith.constant 0 : i32
    %c0_i32_0 = arith.constant 0 : i32
    %c0_i32_1 = arith.constant 0 : i32
    return %c0_i32, %c0_i32_0 : i32, i32
  }
  func.func @transform_6(%arg0: i32) -> (i32, i32) {
    %c0_i32 = arith.constant 0 : i32
    %c0_i32_0 = arith.constant 0 : i32
    %c0_i32_1 = arith.constant 0 : i32
    return %c0_i32, %c0_i32_0 : i32, i32
  }
  func.func @transform_7(%arg0: i32) -> (i32, i32) {
    %c0_i32 = arith.constant 0 : i32
    %c0_i32_0 = arith.constant 0 : i32
    return %c0_i32, %arg0 : i32, i32
  }
}

</mosaic_0001>

<bundles_post_ra>
// kernel: tpu_custom_call.1
= control target key start
LH: loop header
LB: loop body
LE: loop exit
PB: predicated region body
PF: predicated region fallthrough
CT: control target
= control target key end

     0   :  { %s842_s0 = inlined_call_operand.vmem [shape: f32[3,128], index: 0, kind: input, shape index: {}]   ;;  %s843_s1 = inlined_call_operand.vmem [shape: f32[64,3], index: 1, kind: input, shape index: {}]   ;;  %s844_s2 = inlined_call_operand.vmem [shape: f32[64,1], index: 2, kind: input, shape index: {}]   ;;  %s845_s3 = inlined_call_operand.vmem [shape: bf16[64,64], index: 3, kind: input, shape index: {}]   ;;  %s846_s4 = inlined_call_operand.vmem [shape: f32[64,1], index: 4, kind: input, shape index: {}]   ;;  %s847_s5 = inlined_call_operand.vmem [shape: f32[64,1], index: 5, kind: input, shape index: {}]   ;;  %s848_s6 = inlined_call_operand.<no memory space> [shape: f32[1,1], index: 6, kind: input, shape index: {}]   ;;  %s849_s7 = inlined_call_operand.hbm [shape: f32[1,128], index: 7, kind: output, shape index: {}]  }
   0x1   :  { %v12_v0 = vstv %s848_s6 }
   0x2   :  { %13 = vst [vmem:[#allocation2] sm:$0x1] %v12_v0 }
   0x3   :  { %v31_v1 = vld [vmem:[%s843_s1] sm:$0xff]  ;;  %v610_v2 = vmov 2   ;;  %v611_v3 = vmov 1   ;;  %v33_v4 = vld [vmem:[%s843_s1 + $0x10] sm:$0xff]  ;;  %v32_v5 = vld [vmem:[%s843_s1 + $0x8] sm:$0xff] }
   0x4   :  { %566 = vset.pattern.permute.xlu0 %v610_v2  ;;  %565 = vset.pattern.permute.xlu1 %v611_v3  ;;  %v36_v6 = vld [vmem:[%s843_s1 + $0x28] sm:$0xff]  ;;  %v35_v7 = vld [vmem:[%s843_s1 + $0x20] sm:$0xff] }
   0x5   :  { %144 = vperm.xlu0 %566, %v31_v1   ;;  %92 = vperm.xlu1 %565, %v31_v1  }
   0x9   :  { %152 = vperm.xlu0 %566, %v33_v4   ;;  %96 = vperm.xlu1 %565, %v32_v5  }
   0xd   :  { %164 = vperm.xlu0 %566, %v36_v6   ;;  %567 = vset.pattern.permute.xlu1 %v610_v2 }
   0xe   :  { %148 = vperm.xlu1 %567, %v32_v5  }
  0x11   :  { %574 = vset.pattern.permute.xlu0 %v611_v3 }
  0x12   :  { %14 = vsyncpa [#allocation4], 0  ;;  %108 = vperm.xlu0 %574, %v35_v7   ;;  %v612_v8 = vmov 0   ;;  %v38_v9 = vld [vmem:[%s843_s1 + $0x38] sm:$0xff]  ;;  %v195_v11 = vld [vmem:[%s844_s2] sm:$0xff]  ;;  %vm339_vm0 = vcmask 523264   ;;  %v79_v45 = vlaneseq }
  0x13   :  { %568 = vset.pattern.permute.xlu1 %v612_v8  ;;  %v34_v10 = vld [vmem:[%s843_s1 + $0x18] sm:$0xff]  ;;  %v196_v12 = vld [vmem:[%s844_s2 + $0x8] sm:$0xff]  ;;  %v37_v13 = vld [vmem:[%s843_s1 + $0x30] sm:$0xff] }
  0x14   :  { %51 = vperm.xlu1 %568, %v33_v4   ;;  %v199_v14 = vld [vmem:[%s844_s2 + $0x20] sm:$0xff]  ;;  %v202_v15 = vld [vmem:[%s844_s2 + $0x38] sm:$0xff]  ;;  %v272_v16 = vld [vmem:[%s846_s4 + $0x8] sm:$0xff]  ;;  %v775_v47 = vshrl.u32 %v79_v45, 7 }
  0x15   :  { %v274_v17 = vld [vmem:[%s846_s4 + $0x18] sm:$0xff]  ;;  %v197_v18 = vld [vmem:[%s844_s2 + $0x10] sm:$0xff]  ;;  %v426_v19 = vld [vmem:[%s847_s5 + $0x8] sm:$0xff] }
  0x16   :  { %120 = vperm.xlu0 %574, %v38_v9   ;;  %v198_v20 = vld [vmem:[%s844_s2 + $0x18] sm:$0xff]  ;;  %v427_v21 = vld [vmem:[%s847_s5 + $0x10] sm:$0xff]  ;;  %v429_v23 = vld [vmem:[%s847_s5 + $0x20] sm:$0xff]  ;;  %v125_v50 = vsub.s32 1, %v775_v47  ;;  %v81_v51 = vsub.s32 0, %v775_v47  ;;  %v177_v55 = vsub.s32 2, %v775_v47 }
  0x17   :  { %v428_v22 = vld [vmem:[%s847_s5 + $0x18] sm:$0xff]  ;;  %v430_v24 = vld [vmem:[%s847_s5 + $0x28] sm:$0xff]  ;;  %v201_v27 = vld [vmem:[%s844_s2 + $0x30] sm:$0xff] }
  0x18   :  { %569 = vset.pattern.permute.xlu1 %v611_v3  ;;  %v432_v25 = vld [vmem:[%s847_s5 + $0x38] sm:$0xff]  ;;  %v200_v26 = vld [vmem:[%s844_s2 + $0x28] sm:$0xff]  ;;  %v271_v28 = vld [vmem:[%s846_s4] sm:$0xff] }
  0x19   :  { %100 = vperm.xlu1 %569, %v33_v4   ;;  %v273_v29 = vld [vmem:[%s846_s4 + $0x10] sm:$0xff]  ;;  %v580_v30 = vld [vmem:[%s845_s3] sm:$0xff]   ;;  %v276_v34 = vld [vmem:[%s846_s4 + $0x28] sm:$0xff] }
  0x1a   :  { %577 = vset.pattern.permute.xlu0 %v612_v8  ;;  %v581_v31 = vld [vmem:[%s845_s3 + $0x10] sm:$0xff]   ;;  %v425_v32 = vld [vmem:[%s847_s5] sm:$0xff]  ;;  %545 = vmatprep.mubr.msk.bf16.mxu0 %vm339_vm0, %v580_v30  ;;  %v278_v36 = vld [vmem:[%s846_s4 + $0x38] sm:$0xff] }
  0x1b   :  { %41 = vperm.xlu0 %577, %v31_v1   ;;  %549 = vmatprep.mubr.msk.bf16.mxu1 %vm339_vm0, %v581_v31  ;;  %v275_v33 = vld [vmem:[%s846_s4 + $0x20] sm:$0xff]  ;;  %v277_v35 = vld [vmem:[%s846_s4 + $0x30] sm:$0xff] }
  0x1c   :  { %v431_v37 = vld [vmem:[%s847_s5 + $0x30] sm:$0xff]  ;;  %v494_v38 = vld [vmem:[#allocation2] sm:$0x1] }
  0x1d   :  { %104 = vperm.xlu1 %569, %v34_v10   ;;  %v30_v52 = vld [vmem:[%s842_s0] sm:$0x7] }
  0x1e   :  { %v784_v54 = vrot.slane %v30_v52, %v125_v50  ;;  %v789_v56 = vrot.slane %v30_v52, %v81_v51  ;;  %v793_v61 = vrot.slane %v30_v52, %v177_v55 }
  0x1f   :  { %46 = vperm.xlu0 %577, %v32_v5  }
  0x21   :  { %570 = vset.pattern.permute.xlu1 %v610_v2 }
  0x22   :  { %156 = vperm.xlu1 %570, %v34_v10  }
  0x23   :  { %56 = vperm.xlu0 %577, %v34_v10  }
  0x26   :  { %571 = vset.pattern.permute.xlu1 %v612_v8 }
  0x27   :  { %205 = vperm.xlu1 %571, %v195_v11   ;;  %210 = vperm.xlu0 %577, %v196_v12  }
  0x2b   :  { %61 = vperm.xlu1 %571, %v35_v7   ;;  %71 = vperm.xlu0 %577, %v37_v13  }
  0x2f   :  { %66 = vperm.xlu1 %571, %v36_v6   ;;  %225 = vperm.xlu0 %577, %v199_v14  }
  0x33   :  { %572 = vset.pattern.permute.xlu1 %v611_v3  ;;  %240 = vperm.xlu0 %577, %v202_v15  }
  0x34   :  { %112 = vperm.xlu1 %572, %v36_v6  }
  0x37   :  { %286 = vperm.xlu0 %577, %v272_v16  }
  0x38   :  { %573 = vset.pattern.permute.xlu1 %v610_v2 }
  0x39   :  { %160 = vperm.xlu1 %573, %v35_v7  }
  0x3b   :  { %296 = vperm.xlu0 %577, %v274_v17  }
  0x3d   :  { %575 = vset.pattern.permute.xlu1 %v612_v8 }
  0x3e   :  { %215 = vperm.xlu1 %575, %v197_v18  }
  0x3f   :  { %440 = vperm.xlu0 %577, %v426_v19  }
  0x42   :  { %220 = vperm.xlu1 %575, %v198_v20  }
  0x43   :  { %445 = vperm.xlu0 %577, %v427_v21  }
  0x46   :  { %76 = vperm.xlu1 %575, %v38_v9  }
  0x47   :  { %450 = vperm.xlu0 %577, %v428_v22  }
  0x4a   :  { %576 = vset.pattern.permute.xlu1 %v611_v3 }
  0x4b   :  { %116 = vperm.xlu1 %576, %v37_v13   ;;  %455 = vperm.xlu0 %577, %v429_v23  }
  0x4f   :  { %578 = vset.pattern.permute.xlu1 %v610_v2  ;;  %460 = vperm.xlu0 %577, %v430_v24  }
  0x50   :  { %168 = vperm.xlu1 %578, %v37_v13  }
  0x53   :  { %470 = vperm.xlu0 %577, %v432_v25  }
  0x54   :  { %172 = vperm.xlu1 %578, %v38_v9  }
  0x58   :  { %579 = vset.pattern.permute.xlu1 %v612_v8 }
  0x59   :  { %230 = vperm.xlu1 %579, %v200_v26  }
  0x5d   :  { %235 = vperm.xlu1 %579, %v201_v27  }
  0x61   :  { %281 = vperm.xlu1 %579, %v271_v28  }
  0x65   :  { %291 = vperm.xlu1 %579, %v273_v29  }
  0x69   :  { %435 = vperm.xlu1 %579, %v425_v32  }
  0x6d   :  { %301 = vperm.xlu1 %579, %v275_v33  }
  0x71   :  { %306 = vperm.xlu1 %579, %v276_v34  }
  0x75   :  { %311 = vperm.xlu1 %579, %v277_v35  }
  0x79   :  { %316 = vperm.xlu1 %579, %v278_v36  }
  0x7d   :  { %465 = vperm.xlu1 %579, %v431_v37  }
  0x81   :  { %497 = vperm.xlu1 %579, %v494_v38  }
  0x84   :  { %v93_v39 = vpop.permute.xlu1 %92  ;;  %v145_v40 = vpop.permute.xlu0 %144 }
  0x85   :  { %v127_v60 = vmul.f32 %v784_v54, %v93_v39  ;;  %v179_v1 = vmul.f32 %v793_v61, %v145_v40 }
  0x88   :  { %v97_v41 = vpop.permute.xlu1 %96  ;;  %v153_v42 = vpop.permute.xlu0 %152 }
  0x89   :  { %v128_v63 = vmul.f32 %v784_v54, %v97_v41  ;;  %v181_v23 = vmul.f32 %v793_v61, %v153_v42 }
  0x8c   :  { %v771_v43 = vpop.permute.xlu0 %164 }
  0x8d   :  { %v149_v44 = vpop.permute.xlu1 %148 }
  0x8e   :  { %v180_v6 = vmul.f32 %v793_v61, %v149_v44 }
  0x91   :  { %v773_v46 = vpop.permute.xlu0 %108 }
  0x92   :  { %v131_v39 = vmul.f32 %v784_v54, %v773_v46 }
  0x93   :  { %v52_v48 = vpop.permute.xlu1 %51 }
  0x94   :  { %v85_v20 = vmul.f32 %v789_v56, %v52_v48 }
  0x95   :  { %v777_v49 = vpop.permute.xlu0 %120 }
  0x98   :  { %v101_v53 = vpop.permute.xlu1 %100 }
  0x99   :  { %v129_v19 = vmul.f32 %v784_v54, %v101_v53  ;;  %v134_v53 = vmul.f32 %v784_v54, %v777_v49 }
  0x9a   :  { %v42_v57 = vpop.permute.xlu0 %41 }
  0x9b   :  { %v83_v59 = vmul.f32 %v789_v56, %v42_v57  ;;  %v137_v24 = vadd.f32 %v129_v19, %v85_v20 }
  0x9c   :  { %v105_v58 = vpop.permute.xlu1 %104 }
  0x9d   :  { %v135_v2 = vadd.f32 %v127_v60, %v83_v59  ;;  %v130_v25 = vmul.f32 %v784_v54, %v105_v58  ;;  %v189_v29 = vadd.f32 %v181_v23, %v137_v24  ;;  %v184_v60 = vmul.f32 %v793_v61, %v771_v43 }
  0x9e   :  { %v47_v62 = vpop.permute.xlu0 %46 }
  0x9f   :  { %v84_v0 = vmul.f32 %v789_v56, %v47_v62  ;;  %v187_v7 = vadd.f32 %v179_v1, %v135_v2 }
  0xa1   :  { %v157_v3 = vpop.permute.xlu1 %156  ;;  %v136_v4 = vadd.f32 %v128_v63, %v84_v0 }
  0xa2   :  { %v57_v5 = vpop.permute.xlu0 %56  ;;  %v182_v28 = vmul.f32 %v793_v61, %v157_v3 }
  0xa3   :  { %v188_v9 = vadd.f32 %v180_v6, %v136_v4  ;;  %v86_v21 = vmul.f32 %v789_v56, %v57_v5 }
  0xa5   :  { %v138_v26 = vadd.f32 %v130_v25, %v86_v21 }
  0xa6   :  { %v206_v8 = vpop.permute.xlu1 %205  ;;  %v211_v11 = vpop.permute.xlu0 %210 }
  0xa7   :  { %v243_v10 = vadd.f32 %v206_v8, %v187_v7  ;;  %v244_v12 = vadd.f32 %v211_v11, %v188_v9  ;;  %v190_v31 = vadd.f32 %v182_v28, %v138_v26 }
  0xa9   :  { %v251_v13 = vmax.f32 %v243_v10, 0.0  ;;  %v252_v14 = vmax.f32 %v244_v12, 0.0 }
  0xaa   :  { %v62_v15 = vpop.permute.xlu1 %61  ;;  %v72_v41 = vpop.permute.xlu0 %71 }
  0xab   :  { %v267_v16 = vpack.c.bf16 %v252_v14, %v251_v13  ;;  %v87_v40 = vmul.f32 %v789_v56, %v62_v15  ;;  %v89_v0 = vmul.f32 %v789_v56, %v72_v41  ;;  %v583_v15 = vld [vmem:[%s845_s3 + $0x18] sm:$0xff]  }
  0xad   :  { %537 = vmatprep.subr.bf16.mxu0 %v267_v16  ;;  %553 = vmatprep.subr.bf16.mxu1 %v267_v16  ;;  %v139_v48 = vadd.f32 %v131_v39, %v87_v40 }
  0xae   :  { %v67_v17 = vpop.permute.xlu1 %66  ;;  %538 = vmatpush3.bf16.msra.mxu0 %v267_v16  ;;  %557 = vmatpush3.bf16.msra.mxu1 %v267_v16  ;;  %v226_v46 = vpop.permute.xlu0 %225 }
  0xaf   :  { %v88_v50 = vmul.f32 %v789_v56, %v67_v17 }
  0xb2   :  { %v241_v7 = vpop.permute.xlu0 %240 }
  0xb3   :  { %v113_v18 = vpop.permute.xlu1 %112 }
  0xb4   :  { %v132_v42 = vmul.f32 %v784_v54, %v113_v18 }
  0xb6   :  { %v140_v55 = vadd.f32 %v132_v42, %v88_v50  ;;  %v287_v16 = vpop.permute.xlu0 %286 }
  0xb8   :  { %v161_v22 = vpop.permute.xlu1 %160  ;;  %v192_v4 = vadd.f32 %v184_v60, %v140_v55 }
  0xb9   :  { %v183_v44 = vmul.f32 %v793_v61, %v161_v22 }
  0xba   :  { %v297_v18 = vpop.permute.xlu0 %296 }
  0xbb   :  { %v191_v57 = vadd.f32 %v183_v44, %v139_v48 }
  0xbd   :  { %v216_v27 = vpop.permute.xlu1 %215  ;;  %v247_v1 = vadd.f32 %v226_v46, %v191_v57 }
  0xbe   :  { %v245_v30 = vadd.f32 %v216_v27, %v189_v29  ;;  %v441_v20 = vpop.permute.xlu0 %440 }
  0xbf   :  { %v255_v9 = vmax.f32 %v247_v1, 0.0 }
  0xc0   :  { %v253_v34 = vmax.f32 %v245_v30, 0.0 }
  0xc1   :  { %v221_v32 = vpop.permute.xlu1 %220 }
  0xc2   :  { %v246_v33 = vadd.f32 %v221_v32, %v190_v31  ;;  %v446_v22 = vpop.permute.xlu0 %445 }
  0xc4   :  { %v254_v35 = vmax.f32 %v246_v33, 0.0 }
  0xc5   :  { %v77_v36 = vpop.permute.xlu1 %76 }
  0xc6   :  { %v268_v37 = vpack.c.bf16 %v254_v35, %v253_v34  ;;  %v90_v52 = vmul.f32 %v789_v56, %v77_v36  ;;  %v451_v24 = vpop.permute.xlu0 %450 }
  0xc8   :  { %539 = vmatprep.subr.bf16.mxu0 %v268_v37  ;;  %554 = vmatprep.subr.bf16.mxu1 %v268_v37  ;;  %v142_v62 = vadd.f32 %v134_v53, %v90_v52 }
  0xc9   :  { %540 = vmatpush3.bf16.msra.mxu0 %v268_v37  ;;  %558 = vmatpush3.bf16.msra.mxu1 %v268_v37 }
  0xca   :  { %v117_v38 = vpop.permute.xlu1 %116  ;;  %v456_v44 = vpop.permute.xlu0 %455 }
  0xcb   :  { %v133_v63 = vmul.f32 %v784_v54, %v117_v38 }
  0xcd   :  { %v141_v5 = vadd.f32 %v133_v63, %v89_v0 }
  0xce   :  { %v461_v0 = vpop.permute.xlu0 %460 }
  0xcf   :  { %v169_v45 = vpop.permute.xlu1 %168 }
  0xd0   :  { %v185_v2 = vmul.f32 %v793_v61, %v169_v45 }
  0xd2   :  { %v193_v11 = vadd.f32 %v185_v2, %v141_v5 }
  0xd3   :  { %v173_v58 = vpop.permute.xlu1 %172 }
  0xd4   :  { %v186_v59 = vmul.f32 %v793_v61, %v173_v58  ;;  %v582_v61 = vld [vmem:[%s845_s3 + $0x8] sm:$0xff]   ;;  %s613_s3 = smov [#allocation3]  }
  0xd5   :  { %s513_s22 = sshll.u32 %s613_s3, 4  ;;  %s514_s22 = int_to_ptr.vmem [resolvable:$true] %s513_s22 }
  0xd6   :  { %v194_v3 = vadd.f32 %v186_v59, %v142_v62  ;;  %s586_s23 = scalar_lea.vmem %s514_s22, 16  ;;  %s590_s24 = scalar_lea.vmem %s514_s22, 32 }
  0xd7   :  { %p587_p0 = scmp.ne.s32.totalorder %s514_s22, %s586_s23  ;;  %p591_p1 = scmp.lt.s32.totalorder %s514_s22, %s514_s22 }
  0xd8   :  { %v231_v49 = vpop.permute.xlu1 %230  ;;  %v250_v8 = vadd.f32 %v241_v7, %v194_v3  ;;  %p592_p2 = scmp.lt.s32.totalorder %s590_s24, %s586_s23 }
  0xd9   :  { %v248_v6 = vadd.f32 %v231_v49, %v192_v4 }
  0xda   :  { %v258_v54 = vmax.f32 %v250_v8, 0.0  ;;  %p593_p3 = por %p592_p2, %p591_p1 }
  0xdb   :  { %v256_v10 = vmax.f32 %v248_v6, 0.0 }
  0xdc   :  { %v236_v12 = vpop.permute.xlu1 %235  ;;  %p594_p4 = pnand %p593_p3, %p587_p0 }
  0xdd   :  { %v269_v43 = vpack.c.bf16 %v256_v10, %v255_v9  ;;  %v249_v13 = vadd.f32 %v236_v12, %v193_v11  ;;  %v471_v9 = vpop.permute.xlu0 %470 }
  0xdf   :  { %v257_v14 = vmax.f32 %v249_v13, 0.0  ;;  %541 = vmatprep.subr.bf16.mxu0 %v269_v43  ;;  %555 = vmatprep.subr.bf16.mxu1 %v269_v43 }
  0xe0   :  { %542 = vmatpush3.bf16.msra.mxu0 %v269_v43  ;;  %559 = vmatpush3.bf16.msra.mxu1 %v269_v43  ;;  %v282_v17 = vpop.permute.xlu1 %281 }
  0xe1   :  { %v270_v56 = vpack.c.bf16 %v258_v54, %v257_v14 }
  0xe3   :  { %543 = vmatprep.subr.bf16.mxu0 %v270_v56  ;;  %556 = vmatprep.subr.bf16.mxu1 %v270_v56 }
  0xe4   :  { %544 = vmatpush3.bf16.msra.mxu0 %v270_v56  ;;  %560 = vmatpush3.bf16.msra.mxu1 %v270_v56  ;;  %v292_v19 = vpop.permute.xlu1 %291 }
  0xe7   :  { %546 = vmatmul.mubr.msk.bf16.vlgmr.msra.gmra.mrb[0].mxu0 %vm339_vm0, %v582_v61  ;;  %550 = vmatmul.mubr.msk.bf16.vlgmr.msra.gmra.mrb[0].mxu1 %vm339_vm0, %v583_v15 }
  0xe8   :  { %v436_v21 = vpop.permute.xlu1 %435 }
  0xec   :  { %v302_v23 = vpop.permute.xlu1 %301 }
  0xf0   :  { %v307_v25 = vpop.permute.xlu1 %306 }
  0xf4   :  { %v312_v39 = vpop.permute.xlu1 %311 }
  0xf8   :  { %v317_v46 = vpop.permute.xlu1 %316 }
  0xfc   :  { %v466_v6 = vpop.permute.xlu1 %465 }
 0x100   :  { %v498_v56 = vpop.permute.xlu1 %497 }
 0x101   :  { %v503_v15 = vrot.slane %v498_v56, %v81_v51 }
 0x1ba   :  { %v547_v26 = vpop.f32.mrb[0].mxu0  ;;  %v551_v27 = vpop.f32.mrb[0].mxu1 }
 0x1bb   :  { %v386_v28 = vpop.f32.mrb[1].mxu0  ;;  %v402_v29 = vpop.f32.mrb[1].mxu1  ;;  %v395_v30 = vadd.f32 %v547_v26, %v292_v19  ;;  %v411_v55 = vadd.f32 %v551_v27, %v312_v39 }
 0x1bc   :  { %v387_v31 = vadd.f32 %v386_v28, %v282_v17  ;;  %v548_v32 = vpop.f32.mrb[2].mxu0  ;;  %v552_v33 = vpop.f32.mrb[2].mxu1  ;;  %v403_v41 = vadd.f32 %v402_v29, %v302_v23 }
 0x1bd   :  { %v389_v34 = vpop.f32.mrb[3].mxu0  ;;  %v405_v35 = vpop.f32.mrb[3].mxu1  ;;  %v398_v37 = vadd.f32 %v548_v32, %v297_v18  ;;  %v419_v40 = vmax.f32 %v395_v30, 0.0  ;;  %v414_v60 = vadd.f32 %v552_v33, %v317_v46  ;;  %v423_v1 = vmax.f32 %v411_v55, 0.0 }
 0x1be   :  { %v417_v36 = vmax.f32 %v387_v31, 0.0  ;;  %v390_v38 = vadd.f32 %v389_v34, %v287_v16  ;;  %v406_v52 = vadd.f32 %v405_v35, %v307_v25  ;;  %v421_v57 = vmax.f32 %v403_v41, 0.0 }
 0x1bf   :  { %v420_v48 = vmax.f32 %v398_v37, 0.0  ;;  %v475_v53 = vmul.f32 %v446_v22, %v419_v40  ;;  %v424_v4 = vmax.f32 %v414_v60, 0.0  ;;  %v479_v7 = vmul.f32 %v466_v6, %v423_v1 }
 0x1c0   :  { %v418_v42 = vmax.f32 %v390_v38, 0.0  ;;  %v473_v45 = vmul.f32 %v436_v21, %v417_v36  ;;  %v422_v63 = vmax.f32 %v406_v52, 0.0  ;;  %v477_v2 = vmul.f32 %v456_v44, %v421_v57 }
 0x1c1   :  { %v476_v59 = vmul.f32 %v451_v24, %v420_v48  ;;  %v480_v10 = vmul.f32 %v471_v9, %v424_v4 }
 0x1c2   :  { %v474_v50 = vmul.f32 %v441_v20, %v418_v42  ;;  %v478_v49 = vmul.f32 %v461_v0, %v422_v63 }
 0x1c4   :  { %v481_v58 = vadd.f32 %v474_v50, %v473_v45 }
 0x1c6   :  { %v482_v62 = vadd.f32 %v481_v58, %v475_v53 }
 0x1c8   :  { %v483_v3 = vadd.f32 %v482_v62, %v476_v59 }
 0x1ca   :  { %v484_v5 = vadd.f32 %v483_v3, %v477_v2 }
 0x1cc   :  { %v485_v8 = vadd.f32 %v484_v5, %v478_v49 }
 0x1ce   :  { %v486_v11 = vadd.f32 %v485_v8, %v479_v7 }
 0x1d0   :  { %v487_v12 = vadd.f32 %v486_v11, %v480_v10 }
 0x1d2   :  { %v488_v43 = vrot.slane %v487_v12, 4 }
 0x1d4   :  { %v489_v13 = vadd.f32 %v488_v43, %v487_v12 }
 0x1d6   :  { %v490_v14 = vrot.slane %v489_v13, 2 }
 0x1d8   :  { %v491_v54 = vadd.f32 %v490_v14, %v489_v13 }
 0x1da   :  { %v492_v61 = vrot.slane %v491_v54, 1 }
 0x1dc   :  { %v493_v16 = vadd.f32 %v492_v61, %v491_v54 }
 0x1de   :  { %v504_v17 = vadd.f32 %v503_v15, %v493_v16 }
 0x1e0   :  { %584 = vtanh.f32 %v504_v17 }
 0x1ea   :  { %v585_v18 = vpop.eup %584 }
 0x1eb   :  { %506 = vst [vmem:[#allocation3] sm:$0x1] %v585_v18 }
 0x1ec   :  { %597 = shalt.err (!%p594_p4)
}
 0x1ed   :  { %s598_s27 = scalar_lea.hbm %s849_s7, 16 }
 0x1ee   :  { %p599_p5 = scmp.ne.s32.totalorder %s849_s7, %s598_s27  ;;  %p602_p6 = scmp.lt.u32.totalorder %s598_s27, %s849_s7 }
 0x1f0   :  { %p604_p7 = pnand %p602_p6, %p599_p5 }
 0x1f2   :  { %607 = shalt.err (!%p604_p7)
}
 0x1f3   :  { %516 = dma.vmem_to_hbm [thread:$0]  %s514_s22, 16, %s849_s7, [#allocation4]  }
 0x1f4   :  { %608 = dma.done.wait [#allocation4], 16  }
 0x1f5   :  { %609 = vsyncadd [#allocation4], 4294967280 }
 0x1f6   :  { %520 = vsyncpa [#allocation4], 1 }

</bundles_post_ra>
